<compile_context>
chip_gen: v6e
topology: v6e:2x2x1
jax: 0.10.0
libtpu: 0.0.40
codegen_flags: <defaults>
</compile_context>

<pallas_src>
import functools
import math

import jax
import jax.numpy as jnp
import numpy as np
from jax.experimental import pallas as pl
from jax.experimental.pallas import tpu as pltpu


def _mask_decoder_kernel(pix_ref, qk_ref, tokwo_ref, wvo_ref, masks_ref, tokout_ref):
    """One grid step == Tb video frames, fully batched.

    pix_ref   : [Tb, HW, C]       native dtype (f32 or bf16) image embeddings
    qk_ref    : [Ntok, C]  bf16   precomputed ((tok @ Wq) * scale) @ Wk^T
    tokwo_ref : [Ntok, C]  f32    precomputed tok @ Wo (residual term)
    wvo_ref   : [C, C]     bf16   precomputed Wv @ Wo
    masks_ref : [Tb*Ntok, HW] int8  (out_mask_logits > 0.0)
    tokout_ref: [Tb*Ntok, C]  f32   transformer token output (the "hook" capture)
    """
    Tb, HW, C = pix_ref.shape
    Ntok = qk_ref.shape[0]
    f32 = jnp.float32
    bf16 = jnp.bfloat16

    # In-kernel cast of the streaming operand (saves a separate wrapper HBM pass);
    # hidden under the MXU work. No-op if the caller already supplies bf16.
    pix = pix_ref[...].astype(bf16)                                   # [Tb, HW, C]

    # Frame-invariant operands (tiny), broadcast once per grid step.
    qk_b = jnp.broadcast_to(qk_ref[...][None], (Tb, Ntok, C))         # bf16
    tok_wo = tokwo_ref[...]                                           # [Ntok, C] f32
    wvo = wvo_ref[...]                                                # [C, C]   bf16

    # scores[t, n, p] = sum_c qk[n, c] * pix[t, p, c]   (Tb-batched, one dot_general)
    scores = jnp.einsum('tnc,tpc->tnp', qk_b, pix,
                        preferred_element_type=f32)                   # [Tb, Ntok, HW]

    # Max-stabilized softmax numerator in f32.
    m = scores.max(axis=-1, keepdims=True)                            # [Tb, Ntok, 1]
    p = jnp.exp(scores - m)                                           # [Tb, Ntok, HW]
    s = p.sum(axis=-1, keepdims=True)                                 # [Tb, Ntok, 1]

    # ctx = attn @ pix, with the 1/sum applied exactly on the small [Tb,Ntok,C] side
    # (it feeds the returned hook tensor; mask signs are scale-invariant anyway).
    ctx = jnp.einsum('tnp,tpc->tnc', p.astype(bf16), pix,
                     preferred_element_type=f32)                      # [Tb, Ntok, C]
    ctx = ctx * (1.0 / s)

    # tok_out = tok@Wo + (attn@pix) @ (Wv@Wo)
    tok_out = tok_wo[None, :, :] + jnp.dot(
        ctx.reshape(Tb * Ntok, C).astype(bf16), wvo,
        preferred_element_type=f32).reshape(Tb, Ntok, C)              # [Tb, Ntok, C]
    tokout_ref[...] = tok_out.reshape(Tb * Ntok, C).astype(tokout_ref.dtype)

    # Hypernetwork mask logits + (> 0.0) threshold; compare on VPU, int8 writeback
    # with (Tb, Ntok) collapsed onto the sublane axis for unmasked lane-dense stores.
    logits = jnp.einsum('tnc,tpc->tnp', tok_out.astype(bf16), pix,
                        preferred_element_type=f32)                   # [Tb, Ntok, HW]
    masks_ref[...] = (logits > 0.0).astype(masks_ref.dtype).reshape(Tb * Ntok, HW)


def _vmem_capacity_bytes():
    try:
        info = pltpu.get_tpu_info()
        cap = getattr(info, "vmem_capacity_bytes", None)
        if cap:
            return int(cap)
    except Exception:
        pass
    return 64 << 20   # conservative default (v7x per-TC VMEM)


def _plan_schedule(T, HW, C, Ntok, in_itemsize):
    """Pick frames_per_step (Tb) and vmem_limit_bytes from the chip's VMEM budget."""
    cap = _vmem_capacity_bytes()

    # Per-frame VMEM footprint: double-buffered pipeline blocks + in-kernel temps.
    per_frame = (2 * HW * C * in_itemsize     # pix block (native dtype, 2 buffers)
                 + HW * C * 2                 # in-kernel bf16 copy of pix
                 + 2 * Ntok * HW              # int8 mask block (2 buffers)
                 + 2 * Ntok * C * 4           # token-output block (2 buffers)
                 + 4 * Ntok * HW * 4)         # scores / p / p_bf16 / logits temps
    fixed = 2 * (Ntok * C * 2 + Ntok * C * 4 + C * C * 2) + (4 << 20)  # invariants + slack

    budget = int(cap * 0.7)
    tb_cap = max(1, (budget - fixed) // per_frame)

    divisors = [d for d in range(1, T + 1) if T % d == 0]
    # Keep >= 2 grid steps (pipelining + v7x 2-TC split) when possible, prefer an
    # even grid length, then take the largest Tb that fits the VMEM budget.
    cands = [d for d in divisors if d <= tb_cap and T // d >= 2]
    if not cands:
        cands = [d for d in divisors if d <= tb_cap] or [1]
    even = [d for d in cands if (T // d) % 2 == 0]
    tb = max(even) if even else max(cands)

    need = fixed + tb * per_frame
    vmem_limit = int(min(max(need + (8 << 20), 32 << 20),
                         max(int(cap * 0.85), 32 << 20)))
    return tb, vmem_limit


@functools.partial(jax.jit, static_argnames=("frames_per_step", "vmem_limit_bytes"))
def _mask_decoder_pallas(image_embeddings, mask_tokens, wq, wk, wv, wo,
                         *, frames_per_step, vmem_limit_bytes):
    """image_embeddings: [T, H*W, C] channels-last. Returns (masks_i8, tok_out)."""
    T, HW, C = image_embeddings.shape
    Ntok = mask_tokens.shape[0]
    Tb = frames_per_step
    assert T % Tb == 0, "frames_per_step must divide T"

    f32 = jnp.float32
    bf16 = jnp.bfloat16
    scale = 1.0 / math.sqrt(C)

    # Frame-invariant precompute (tiny [Ntok,C]/[C,C] matmuls, done once):
    #   qk    = ((tok @ Wq) * scale) @ Wk^T     (scale folded in)
    #   tokwo = tok @ Wo
    #   wvo   = Wv @ Wo
    # NOTE: C is kept as given; padding the contraction dim to 256 for the v6e/v7x
    # 256-deep MXU would double the pix HBM read, so it is intentionally skipped.
    tok_f = mask_tokens.astype(f32)
    qk = ((tok_f @ wq.astype(f32)) * scale) @ wk.astype(f32).T     # [Ntok, C]
    tok_wo = tok_f @ wo.astype(f32)                                # [Ntok, C]
    wvo = wv.astype(f32) @ wo.astype(f32)                          # [C, C]

    # NOTE: the three frame-invariant operands could be single-buffered
    # (pipeline_mode=pl.Buffered(1)) to shave a little VMEM on v7x; their footprint
    # is negligible at these sizes, so default buffering is kept for robustness.
    grid_spec = pltpu.PrefetchScalarGridSpec(
        num_scalar_prefetch=0,
        grid=(T // Tb,),
        in_specs=[
            pl.BlockSpec((Tb, HW, C), lambda t: (t, 0, 0)),   # per-step frames (native dtype)
            pl.BlockSpec((Ntok, C), lambda t: (0, 0)),        # qk (shared)
            pl.BlockSpec((Ntok, C), lambda t: (0, 0)),        # tok@Wo (shared)
            pl.BlockSpec((C, C), lambda t: (0, 0)),           # Wv@Wo (shared)
        ],
        out_specs=[
            pl.BlockSpec((Tb * Ntok, HW), lambda t: (t, 0)),  # int8 masks, sublane-dense
            pl.BlockSpec((Tb * Ntok, C), lambda t: (t, 0)),   # token output
        ],
    )

    masks_i8, tok_out = pl.pallas_call(
        _mask_decoder_kernel,
        grid_spec=grid_spec,
        out_shape=(
            jax.ShapeDtypeStruct((T * Ntok, HW), jnp.int8),
            jax.ShapeDtypeStruct((T * Ntok, C), jnp.float32),
        ),
        compiler_params=pltpu.CompilerParams(
            dimension_semantics=("parallel",),        # frame axis -> 2 TCs on v7x
            vmem_limit_bytes=vmem_limit_bytes),
    )(image_embeddings, qk.astype(bf16), tok_wo, wvo.astype(bf16))

    return masks_i8.reshape(T, Ntok, HW), tok_out.reshape(T, Ntok, C)


def segmentation_generator_forward(image_embeddings, mask_tokens,
                                   wq, wk, wv, wo, *, H, W):
    """Mimics the module's return structure:
         (video_segments, transformer_hook_output, masks_bool)."""
    T, HW, C = image_embeddings.shape
    Ntok = mask_tokens.shape[0]
    assert HW == H * W

    in_itemsize = jnp.dtype(image_embeddings.dtype).itemsize
    Tb, vmem_limit = _plan_schedule(T, HW, C, Ntok, in_itemsize)

    masks_i8, tok_out = _mask_decoder_pallas(
        image_embeddings, mask_tokens, wq, wk, wv, wo,
        frames_per_step=Tb, vmem_limit_bytes=vmem_limit)

    # Host glue: one bulk transfer, then numpy slicing (no per-frame device ops).
    # NOTE: mask bits may flip where |logit| ~ 0 due to the bf16 MXU path and
    # reassociated (attn@pix)@(Wv@Wo) order — acceptable for segmentation masks.
    masks_np = np.asarray(jax.device_get(masks_i8)).astype(bool)
    masks_np = masks_np.reshape(T, Ntok, H, W)
    # video_segments[frame_idx] = {obj_id: bool mask [1, H, W]}  (obj_id=1)
    video_segments = {int(t): {1: masks_np[t, 0:1]} for t in range(T)}
    # tok_out plays the role of self.outputs['sam_mask_decoder_transformer'][1]
    return video_segments, tok_out, masks_np


def _reference_forward(image_embeddings, mask_tokens, wq, wk, wv, wo):
    """Pure-JAX f32 reference with the original (non-reassociated) math."""
    C = mask_tokens.shape[-1]
    scale = 1.0 / math.sqrt(C)
    q = mask_tokens @ wq                                        # [Ntok, C]
    k = jnp.einsum('tpc,cd->tpd', image_embeddings, wk)         # [T, HW, C]
    v = jnp.einsum('tpc,cd->tpd', image_embeddings, wv)         # [T, HW, C]
    scores = jnp.einsum('nd,tpd->tnp', q, k) * scale            # [T, Ntok, HW]
    attn = jax.nn.softmax(scores, axis=-1)
    tok_attn = mask_tokens[None, :, :] + jnp.einsum('tnp,tpd->tnd', attn, v)
    tok_out = jnp.einsum('tnd,de->tne', tok_attn, wo)           # [T, Ntok, C]
    logits = jnp.einsum('tne,tpe->tnp', tok_out, image_embeddings)
    return tok_out, logits > 0.0


if __name__ == "__main__":
    # Small synthetic shapes consistent with SAM2's mask decoder structure:
    # T video frames, C-dim image embedding on an H x W grid, Ntok mask tokens.
    # C=128 keeps the token/logit outputs lane-dense.
    T, C, H, W, Ntok = 4, 128, 16, 16, 8
    HW = H * W

    key = jax.random.PRNGKey(0)
    k_img, k_tok, k_q, k_k, k_v, k_o = jax.random.split(key, 6)

    image_embeddings = jax.random.normal(k_img, (T, HW, C), dtype=jnp.float32)
    mask_tokens = jax.random.normal(k_tok, (Ntok, C), dtype=jnp.float32)
    w_scale = 1.0 / math.sqrt(C)
    wq = jax.random.normal(k_q, (C, C), dtype=jnp.float32) * w_scale
    wk = jax.random.normal(k_k, (C, C), dtype=jnp.float32) * w_scale
    wv = jax.random.normal(k_v, (C, C), dtype=jnp.float32) * w_scale
    wo = jax.random.normal(k_o, (C, C), dtype=jnp.float32) * w_scale

    video_segments, transformer_out, masks_bool = segmentation_generator_forward(
        image_embeddings, mask_tokens, wq, wk, wv, wo, H=H, W=W)
    transformer_out = jax.block_until_ready(transformer_out)

    # Shape / structure sanity (frames -> {obj_id: bool [1, H, W]})
    assert transformer_out.shape == (T, Ntok, C)
    assert transformer_out.dtype == jnp.float32
    assert masks_bool.shape == (T, Ntok, H, W)
    assert masks_bool.dtype == np.bool_
    assert set(video_segments.keys()) == set(range(T))
    assert video_segments[0][1].shape == (1, H, W)
    assert video_segments[0][1].dtype == np.bool_

    # Numerical sanity vs. f32 reference (bf16 MXU path + reassociation =>
    # generous tolerances; masks may flip only for logits extremely near 0).
    ref_tok, ref_masks = _reference_forward(
        image_embeddings, mask_tokens, wq, wk, wv, wo)
    tok_err = float(jnp.max(jnp.abs(transformer_out - ref_tok)))
    agree = float(np.mean(masks_bool == np.asarray(ref_masks).reshape(T, Ntok, H, W)))
    assert np.isfinite(tok_err) and tok_err < 0.5, f"tok_err={tok_err}"
    assert agree > 0.95, f"mask agreement={agree}"

    print("KERNEL_OK")
</pallas_src>

<mosaic_0001>
module attributes {stable_mosaic.version = 11 : i64} {
  func.func @_mask_decoder_kernel(%arg0: i32, %arg1: memref<2x256x128xf32, #tpu.memory_space<vmem>>, %arg2: memref<8x128xbf16, #tpu.memory_space<vmem>>, %arg3: memref<8x128xf32, #tpu.memory_space<vmem>>, %arg4: memref<128x128xbf16, #tpu.memory_space<vmem>>, %arg5: memref<16x256xi8, #tpu.memory_space<vmem>>, %arg6: memref<16x128xf32, #tpu.memory_space<vmem>>) attributes {dimension_semantics = [#tpu.dimension_semantics<parallel>], iteration_bounds = array<i64: 2>, scalar_prefetch = 0 : i64, scratch_operands = 0 : i64, tpu.core_type = #tpu.core_type<tc>, window_params = [{transform_indices = @transform_0, window_bounds = array<i64: 2, 256, 128>}, {pipeline_mode = #tpu.pipeline_mode<synchronous>, transform_indices = @transform_1, window_bounds = array<i64: 8, 128>}, {pipeline_mode = #tpu.pipeline_mode<synchronous>, transform_indices = @transform_2, window_bounds = array<i64: 8, 128>}, {pipeline_mode = #tpu.pipeline_mode<synchronous>, transform_indices = @transform_3, window_bounds = array<i64: 128, 128>}, {transform_indices = @transform_4, window_bounds = array<i64: 16, 256>}, {transform_indices = @transform_5, window_bounds = array<i64: 16, 128>}]} {
    %c0 = arith.constant 0 : index
    %c0_0 = arith.constant 0 : index
    %c0_1 = arith.constant 0 : index
    %0 = vector.load %arg1[%c0, %c0_0, %c0_1] : memref<2x256x128xf32, #tpu.memory_space<vmem>>, vector<2x256x128xf32>
    %1 = arith.truncf %0 : vector<2x256x128xf32> to vector<2x256x128xbf16>
    %c0_2 = arith.constant 0 : index
    %c0_3 = arith.constant 0 : index
    %2 = vector.load %arg2[%c0_2, %c0_3] : memref<8x128xbf16, #tpu.memory_space<vmem>>, vector<8x128xbf16>
    %3 = vector.shape_cast %2 : vector<8x128xbf16> to vector<1x8x128xbf16>
    %4 = vector.shape_cast %3 : vector<1x8x128xbf16> to vector<1x8x128xbf16>
    %5 = vector.broadcast %4 : vector<1x8x128xbf16> to vector<2x8x128xbf16>
    %c0_4 = arith.constant 0 : index
    %c0_5 = arith.constant 0 : index
    %6 = vector.load %arg3[%c0_4, %c0_5] : memref<8x128xf32, #tpu.memory_space<vmem>>, vector<8x128xf32>
    %c0_6 = arith.constant 0 : index
    %c0_7 = arith.constant 0 : index
    %7 = vector.load %arg4[%c0_6, %c0_7] : memref<128x128xbf16, #tpu.memory_space<vmem>>, vector<128x128xbf16>
    "tpu.trace_start"() <{level = 10 : i32, message = "tnc,tpc->tnp"}> : () -> ()
    %cst = arith.constant dense<0.000000e+00> : vector<2x8x256xf32>
    %8 = tpu.matmul %5, %1, %cst {dimension_numbers = #tpu.dot_dimension_numbers<[2], [2], [1], [1], [0, 0, 0, 1, 1, 1], [0], [0]>} : vector<2x8x128xbf16>, vector<2x256x128xbf16>, vector<2x8x256xf32> -> vector<2x8x256xf32>
    "tpu.trace_stop"() : () -> ()
    %cst_8 = arith.constant dense<0xFF800000> : vector<2x8xf32>
    %9 = vector.multi_reduction <maximumf>, %8, %cst_8 [2] : vector<2x8x256xf32> to vector<2x8xf32>
    %10 = vector.shape_cast %9 : vector<2x8xf32> to vector<2x8x1xf32>
    %11 = vector.broadcast %10 : vector<2x8x1xf32> to vector<2x8x256xf32>
    %12 = arith.subf %8, %11 : vector<2x8x256xf32>
    %13 = math.exp %12 : vector<2x8x256xf32>
    %cst_9 = arith.constant dense<0.000000e+00> : vector<2x8xf32>
    %14 = vector.multi_reduction <add>, %13, %cst_9 [2] : vector<2x8x256xf32> to vector<2x8xf32>
    %15 = vector.shape_cast %14 : vector<2x8xf32> to vector<2x8x1xf32>
    %16 = arith.truncf %13 : vector<2x8x256xf32> to vector<2x8x256xbf16>
    "tpu.trace_start"() <{level = 10 : i32, message = "tnp,tpc->tnc"}> : () -> ()
    %cst_10 = arith.constant dense<0.000000e+00> : vector<2x8x128xf32>
    %17 = tpu.matmul %16, %1, %cst_10 {dimension_numbers = #tpu.dot_dimension_numbers<[2], [1], [1], [2], [0, 0, 0, 1, 1, 2], [0], [0]>} : vector<2x8x256xbf16>, vector<2x256x128xbf16>, vector<2x8x128xf32> -> vector<2x8x128xf32>
    "tpu.trace_stop"() : () -> ()
    %cst_11 = arith.constant 1.000000e+00 : f32
    %18 = vector.broadcast %cst_11 : f32 to vector<2x8x1xf32>
    %19 = arith.divf %18, %15 : vector<2x8x1xf32>
    %20 = vector.broadcast %19 : vector<2x8x1xf32> to vector<2x8x128xf32>
    %21 = arith.mulf %17, %20 : vector<2x8x128xf32>
    %22 = vector.shape_cast %6 : vector<8x128xf32> to vector<1x8x128xf32>
    %23 = vector.shape_cast %21 : vector<2x8x128xf32> to vector<16x128xf32>
    %24 = arith.truncf %23 : vector<16x128xf32> to vector<16x128xbf16>
    %cst_12 = arith.constant dense<0.000000e+00> : vector<16x128xf32>
    %25 = tpu.matmul %24, %7, %cst_12 {dimension_numbers = #tpu.dot_dimension_numbers<[1], [0], [0], [1], [0, 0, 1, 1], [], []>} : vector<16x128xbf16>, vector<128x128xbf16>, vector<16x128xf32> -> vector<16x128xf32>
    %26 = vector.shape_cast %25 : vector<16x128xf32> to vector<2x8x128xf32>
    %27 = vector.broadcast %22 : vector<1x8x128xf32> to vector<2x8x128xf32>
    %28 = arith.addf %27, %26 : vector<2x8x128xf32>
    %29 = vector.shape_cast %28 : vector<2x8x128xf32> to vector<16x128xf32>
    %c0_13 = arith.constant 0 : index
    %c0_14 = arith.constant 0 : index
    %30 = vector.load %arg6[%c0_13, %c0_14] : memref<16x128xf32, #tpu.memory_space<vmem>>, vector<16x128xf32>
    tpu.vector_store %arg6[%c0_13, %c0_14], %29 {strides = array<i32>} : memref<16x128xf32, #tpu.memory_space<vmem>>, vector<16x128xf32>,
    %31 = arith.truncf %28 : vector<2x8x128xf32> to vector<2x8x128xbf16>
    "tpu.trace_start"() <{level = 10 : i32, message = "tnc,tpc->tnp"}> : () -> ()
    %cst_15 = arith.constant dense<0.000000e+00> : vector<2x8x256xf32>
    %32 = tpu.matmul %31, %1, %cst_15 {dimension_numbers = #tpu.dot_dimension_numbers<[2], [2], [1], [1], [0, 0, 0, 1, 1, 1], [0], [0]>} : vector<2x8x128xbf16>, vector<2x256x128xbf16>, vector<2x8x256xf32> -> vector<2x8x256xf32>
    %cst_16 = arith.constant 0.000000e+00 : f32
    "tpu.trace_stop"() : () -> ()
    %33 = vector.broadcast %cst_16 : f32 to vector<2x8x256xf32>
    %34 = arith.cmpf ogt, %32, %33 : vector<2x8x256xf32>
    %35 = arith.extui %34 : vector<2x8x256xi1> to vector<2x8x256xi8>
    %36 = vector.shape_cast %35 : vector<2x8x256xi8> to vector<16x256xi8>
    %c0_17 = arith.constant 0 : index
    %c0_18 = arith.constant 0 : index
    %37 = vector.load %arg5[%c0_17, %c0_18] : memref<16x256xi8, #tpu.memory_space<vmem>>, vector<16x256xi8>
    tpu.vector_store %arg5[%c0_17, %c0_18], %36 {strides = array<i32>} : memref<16x256xi8, #tpu.memory_space<vmem>>, vector<16x256xi8>,
    return
  }
  func.func @transform_0(%arg0: i32) -> (i32, i32, i32) {
    %c0_i32 = arith.constant 0 : i32
    %c0_i32_0 = arith.constant 0 : i32
    %c0_i32_1 = arith.constant 0 : i32
    return %arg0, %c0_i32, %c0_i32_0 : i32, i32, i32
  }
  func.func @transform_1(%arg0: i32) -> (i32, i32) {
    %c0_i32 = arith.constant 0 : i32
    %c0_i32_0 = arith.constant 0 : i32
    %c0_i32_1 = arith.constant 0 : i32
    return %c0_i32, %c0_i32_0 : i32, i32
  }
  func.func @transform_2(%arg0: i32) -> (i32, i32) {
    %c0_i32 = arith.constant 0 : i32
    %c0_i32_0 = arith.constant 0 : i32
    %c0_i32_1 = arith.constant 0 : i32
    return %c0_i32, %c0_i32_0 : i32, i32
  }
  func.func @transform_3(%arg0: i32) -> (i32, i32) {
    %c0_i32 = arith.constant 0 : i32
    %c0_i32_0 = arith.constant 0 : i32
    %c0_i32_1 = arith.constant 0 : i32
    return %c0_i32, %c0_i32_0 : i32, i32
  }
  func.func @transform_4(%arg0: i32) -> (i32, i32) {
    %c0_i32 = arith.constant 0 : i32
    %c0_i32_0 = arith.constant 0 : i32
    return %arg0, %c0_i32 : i32, i32
  }
  func.func @transform_5(%arg0: i32) -> (i32, i32) {
    %c0_i32 = arith.constant 0 : i32
    %c0_i32_0 = arith.constant 0 : i32
    return %arg0, %c0_i32 : i32, i32
  }
}

</mosaic_0001>

<bundles_post_ra>
// kernel: _mask_decoder_pallas.1
= control target key start
LH: loop header
LB: loop body
LE: loop exit
PB: predicated region body
PF: predicated region fallthrough
CT: control target
= control target key end

     0   :  { %11 = vsyncpa [#allocation3], 0  ;;  %s1789_s0 = inlined_call_operand.hbm [shape: f32[4,256,128], index: 0, kind: input, shape index: {}]   ;;  %s1790_s1 = inlined_call_operand.vmem [shape: bf16[8,128], index: 1, kind: input, shape index: {}]   ;;  %s1791_s2 = inlined_call_operand.vmem [shape: f32[8,128], index: 2, kind: input, shape index: {}]   ;;  %s1792_s3 = inlined_call_operand.vmem [shape: bf16[128,128], index: 3, kind: input, shape index: {}]   ;;  %s1793_s4 = inlined_call_operand.hbm [shape: s8[32,256], index: 4, kind: output, shape index: {0}]   ;;  %s1794_s5 = inlined_call_operand.hbm [shape: f32[32,128], index: 5, kind: output, shape index: {1}]  }
   0x1   :  { %13 = vsyncpa [#allocation3 + $0x1], 0 }
   0x2   :  { %14 = vsyncpa [#allocation4], 0 }
   0x3   :  { %16 = vsyncpa [#allocation4 + $0x1], 0 }
   0x4   :  { %17 = vsyncpa [#allocation7], 0 }
   0x5   :  { %19 = vsyncpa [#allocation7 + $0x1], 0  ;;  %s1340_s18 = smov 0   ;;  %s1342_s19 = smov 0  }
   0x6   :  { %s1344_s20 = smov 0   ;;  %s1346_s21 = smov 0  }
   0x7 LB: > { %s1361_s22 = sadd.s32 4294967295, %s1296_s21   ;;  %s916_s23 = sadd.s32 4294967294, %s1296_s21   ;;  %s1296_s21 = sphi %s1346_s21, %s1809_s21   ;;  %s1292_s20 = sphi %s1344_s20, %s1808_s20   ;;  %s1288_s19 = sphi %s1342_s19, %s1807_s19   ;;  %s1284_s18 = sphi %s1340_s18, %s1806_s18  }
   0x8   : > { %s1365_s24 = sadd.s32 1, %s1296_s21   ;;  %s32_s25 = sadd.s32 1, %s1292_s20 }
   0x9   : > { %s29_s26 = ssub.s32 %s1296_s21, %s1365_s24  ;;  %p39_p0 = scmp.ne.s32.totalorder %s1292_s20, %s1288_s19 }
   0xa   : > { %p30_p1 = scmp.eq.s32.totalorder %s29_s26, 0  ;;  %p40_p2 = scmp.eq.s32.totalorder %s1296_s21, 0 }
   0xb   : > { %p45_p3 = scmp.ne.s32.totalorder %s1288_s19, %s1284_s18  ;;  %p46_p4 = scmp.eq.s32.totalorder %s1361_s22, 0 }
   0xc   : > { %s1377_s27 = scalar_select %p30_p1, %s1292_s20, %s32_s25  }
   0xd   : > { %p1379_p5 = por %p40_p2, %p39_p0  ;;  %p1383_p6 = por %p46_p4, %p45_p3 }
   0xe   : > { %p132_p7 = scmp.eq.s32.totalorder %s1361_s22, 1  ;;  %p138_p8 = scmp.eq.s32.totalorder %s916_s23, 1 }
   0xf   : > { %s1798_s29 = scalar_select %p1383_p6, 1, 0 }
  0x10   : > { %p1111_p10 = scmp.lt.s32.totalorder %s1296_s21, 2  ;;  %p1390_p11 = por %p132_p7, %p39_p0 }
  0x11   : > { %p1394_p12 = por %p138_p8, %p45_p3  ;;  %s193_s7 = sand.u32 1, %s1292_s20  }
  0x12   : > { %s1799_s30 = scalar_select %p1390_p11, 1, 0 }
  0x13   : > { %s1800_s6 = scalar_select %p1394_p12, 1, 0 }
  0x14   : > { %s945_s8 = sshll.u32 %s1296_s21, 13  ;;  %s919_s9 = sshll.u32 %s193_s7, 9 }
  0x15   : > { %s1403_s12 = scalar_lea.hbm %s1789_s0, %s945_s8  ;;  %s197_s13 = scalar_lea.vmem [#allocation2], %s919_s9 }
  0x16   : > { %s205_s14 = sshll.u32 %s197_s13, 4  ;;  %p1407_p13 = pnand %p1111_p10, %p1379_p5  ;;  %s1411_s14 = int_to_ptr.vmem [resolvable:$true] %s205_s14 }
  0x17   : > { %s1413_s16 = scalar_lea.sflag [#allocation3], %s193_s7  ;;  %s1174_s17 = scalar_lea.hbm %s1403_s12, 8192 }
  0x18   : > { %p1175_p0 = scmp.ne.s32.totalorder %s1403_s12, %s1174_s17  ;;  %p1176_p1 = pneg %p1407_p13 }
  0x19   : > { %s1179_s26 = scalar_lea.hbm %s1789_s0, 16384  ;;  %p1180_p4 = scmp.lt.s32.totalorder %s1403_s12, %s1789_s0 }
  0x1a   : > { %p1177_p2 = pnand %p1176_p1, %p1175_p0  ;;  %p1181_p5 = scmp.lt.s32.totalorder %s1179_s26, %s1174_s17 }
  0x1c   : > { %p1178_p3 = pneg %p1177_p2  ;;  %p1182_p7 = por %p1181_p5, %p1180_p4 }
  0x1e   : > { %p1183_p8 = pnand %p1182_p7, %p1178_p3 }
  0x20   : > { %1186 = shalt.err (!%p1183_p8)
}
  0x21   : > { %s1187_s7 = scalar_lea.vmem %s1411_s14, 8192  ;;  %s1298_s9 = smov [#allocation2]  }
  0x22   : > { %p1188_p10 = scmp.ne.s32.totalorder %s1411_s14, %s1187_s7  ;;  %s1192_s10 = sshll.u32 %s1298_s9, 4  ;;  %s1193_s10 = int_to_ptr.vmem [resolvable:$false] %s1192_s10 }
  0x23   : > { %s1194_s11 = scalar_lea.vmem %s1193_s10, 16384  ;;  %p1195_p2 = scmp.lt.s32.totalorder %s1411_s14, %s1193_s10 }
  0x24   : > { %p1190_p9 = pnand %p1188_p10, %p1176_p1  ;;  %p1196_p12 = scmp.lt.s32.totalorder %s1194_s11, %s1187_s7 }
  0x26   : > { %p1191_p0 = pneg %p1190_p9  ;;  %p1197_p11 = por %p1196_p12, %p1195_p2 }
  0x28   : > { %p1198_p6 = pnand %p1197_p11, %p1191_p0 }
  0x2a   : > { %1201 = shalt.err (!%p1198_p6)
}
  0x2b   : > { %s1299_s13 = smov 128   ;;  %s1300_s17 = smov 8  }
  0x2c   : > { %1103 = dma.hbm_to_vmem [thread:$0]  (!%p1407_p13), %s1403_s12, 8192, %s1411_s14, %s1413_s16, %s1299_s13, %s1299_s13, %s1300_s17  }
  0x2d   : > { %p923_p9 = scmp.ge.s32.totalorder %s1296_s21, 1  ;;  %p213_p1 = scmp.lt.s32.totalorder %s1296_s21, 3 }
  0x2f   : > { %p214_p3 = pnand %p923_p9, %p213_p1 }
  0x30   : > { %s1437_s23 = sand.u32 (!%p214_p3), 1, %s1288_s19   ;;  %p1802_p6 = scmp.ne.s32.totalorder (!%p214_p3), %s1798_s29, 0 }
  0x31   : > { %217 = sbr.rel (%p214_p3) target bundleno = 1106 (0x452), region = 36  ;;  %s924_s25 = sshll.u32 (!%p214_p3), %s1437_s23, 9 }
  0x32   : > { %s220_s26 = scalar_lea.sflag (!%p214_p3), [#allocation3], %s1437_s23  ;;  %s1441_s28 = scalar_lea.vmem (!%p214_p3), [#allocation2], %s924_s25 }
  0x36   : > { %1271 = dma.done.wait (%p1802_p6), %s220_s26, 8192  }
  0x37   : > { %1273 = vsyncadd (%p1802_p6), %s220_s26, 4294959104  ;;  %v291_v0 = vld [vmem:[%s1441_s28 + $0xf0] sm:$0xff]  ;;  %v292_v1 = vld [vmem:[%s1441_s28 + $0xf8] sm:$0xff]  ;;  %vm1302_vm0 = vmmov 0   ;;  %s926_s15 = sshll.u32 %s1437_s23, 4  ;;  %s948_s10 = sshll.u32 %s1361_s22, 8 }
  0x38   : > { %v323_v2 = vld [vmem:[%s1441_s28 + $0x1f0] sm:$0xff]  ;;  %v1450_v3 = vpack.c.bf16 %v292_v1, %v291_v0  ;;  %v324_v4 = vld [vmem:[%s1441_s28 + $0x1f8] sm:$0xff]  ;;  %v289_v11 = vld [vmem:[%s1441_s28 + $0xe0] sm:$0xff]  ;;  %s254_s7 = scalar_lea.vmem [#allocation6], %s926_s15  ;;  %s1714_s17 = scalar_lea.hbm %s1794_s5, %s948_s10 }
  0x39   : > { %v275_v5 = vld [vmem:[%s1441_s28 + $0x70] sm:$0xff]  ;;  %v276_v6 = vld [vmem:[%s1441_s28 + $0x78] sm:$0xff]  ;;  %v1455_v7 = vpack.c.bf16 %v324_v4, %v323_v2  ;;  %v290_v13 = vld [vmem:[%s1441_s28 + $0xe8] sm:$0xff]  ;;  %s811_s9 = sshll.u32 %s254_s7, 4  ;;  %s781_s25 = scalar_lea.sflag [#allocation7], %s1437_s23  ;;  %s1709_s9 = int_to_ptr.vmem [resolvable:$true] %s811_s9 }
  0x3a   : > { %v1457_v8 = vpack.c.bf16 %v276_v6, %v275_v5  ;;  %v307_v9 = vld [vmem:[%s1441_s28 + $0x170] sm:$0xff]  ;;  %v308_v10 = vld [vmem:[%s1441_s28 + $0x178] sm:$0xff]  ;;  %949 = vmatprep.subr.bf16.mxu0 %v1450_v3  ;;  %v321_v14 = vld [vmem:[%s1441_s28 + $0x1e0] sm:$0xff]  ;;  %v1470_v16 = vpack.c.bf16 %v290_v13, %v289_v11  ;;  %s1202_s26 = scalar_lea.vmem %s1709_s9, 256  ;;  %p1803_p12 = scmp.ne.s32.totalorder %s1799_s30, 0 }
  0x3b   : > { %v1463_v12 = vpack.c.bf16 %v308_v10, %v307_v9  ;;  %v322_v15 = vld [vmem:[%s1441_s28 + $0x1e8] sm:$0xff]  ;;  %967 = vmatprep.subr.bf16.mxu1 %v1455_v7  ;;  %v273_v18 = vld [vmem:[%s1441_s28 + $0x60] sm:$0xff]  ;;  %v287_v22 = vld [vmem:[%s1441_s28 + $0xd0] sm:$0xff]  ;;  %p1203_p11 = scmp.ne.s32.totalorder %s1709_s9, %s1202_s26 }
  0x3c   : > { %950 = vmatpush3.bf16.xpose.msra.mxu0 %v1457_v8  ;;  %v1472_v17 = vpack.c.bf16 %v322_v15, %v321_v14  ;;  %v274_v19 = vld [vmem:[%s1441_s28 + $0x68] sm:$0xff]  ;;  %v305_v20 = vld [vmem:[%s1441_s28 + $0x160] sm:$0xff]  ;;  %v288_v23 = vld [vmem:[%s1441_s28 + $0xd8] sm:$0xff] }
  0x3d   : > { %968 = vmatpush3.bf16.xpose.msra.mxu1 %v1463_v12  ;;  %951 = vmatprep.subr.bf16.mxu0 %v1470_v16  ;;  %v306_v21 = vld [vmem:[%s1441_s28 + $0x168] sm:$0xff]  ;;  %v319_v24 = vld [vmem:[%s1441_s28 + $0x1d0] sm:$0xff]  ;;  %v320_v25 = vld [vmem:[%s1441_s28 + $0x1d8] sm:$0xff]  ;;  %v1485_v26 = vpack.c.bf16 %v274_v19, %v273_v18  ;;  %v1489_v28 = vpack.c.bf16 %v288_v23, %v287_v22  ;;  %p1204_p13 = pnand %p1203_p11, %p1803_p12 }
  0x3e   : > { %969 = vmatprep.subr.bf16.mxu1 %v1472_v17  ;;  %v1487_v27 = vpack.c.bf16 %v306_v21, %v305_v20  ;;  %v1491_v29 = vpack.c.bf16 %v320_v25, %v319_v24  ;;  %v271_v30 = vld [vmem:[%s1441_s28 + $0x50] sm:$0xff]  ;;  %v272_v31 = vld [vmem:[%s1441_s28 + $0x58] sm:$0xff]  ;;  %v285_v34 = vld [vmem:[%s1441_s28 + $0xc0] sm:$0xff] }
  0x3f   : > { %v303_v32 = vld [vmem:[%s1441_s28 + $0x150] sm:$0xff]  ;;  %v304_v33 = vld [vmem:[%s1441_s28 + $0x158] sm:$0xff]  ;;  %v286_v35 = vld [vmem:[%s1441_s28 + $0xc8] sm:$0xff]  ;;  %v1505_v38 = vpack.c.bf16 %v272_v31, %v271_v30  ;;  %p1205_p4 = pneg %p1204_p13 }
  0x40   : > { %v317_v36 = vld [vmem:[%s1441_s28 + $0x1c0] sm:$0xff]  ;;  %v318_v37 = vld [vmem:[%s1441_s28 + $0x1c8] sm:$0xff]  ;;  %v1507_v39 = vpack.c.bf16 %v304_v33, %v303_v32  ;;  %v1509_v40 = vpack.c.bf16 %v286_v35, %v285_v34  ;;  %v283_v46 = vld [vmem:[%s1441_s28 + $0xb0] sm:$0xff] }
  0x41   : > { %v1511_v41 = vpack.c.bf16 %v318_v37, %v317_v36  ;;  %v269_v42 = vld [vmem:[%s1441_s28 + $0x40] sm:$0xff]  ;;  %v270_v43 = vld [vmem:[%s1441_s28 + $0x48] sm:$0xff]  ;;  %v284_v47 = vld [vmem:[%s1441_s28 + $0xb8] sm:$0xff] }
  0x42   : > { %v301_v44 = vld [vmem:[%s1441_s28 + $0x140] sm:$0xff]  ;;  %v302_v45 = vld [vmem:[%s1441_s28 + $0x148] sm:$0xff]  ;;  %v315_v48 = vld [vmem:[%s1441_s28 + $0x1b0] sm:$0xff]  ;;  %v1532_v51 = vpack.c.bf16 %v270_v43, %v269_v42  ;;  %v1536_v53 = vpack.c.bf16 %v284_v47, %v283_v46 }
  0x43   : > { %v316_v49 = vld [vmem:[%s1441_s28 + $0x1b8] sm:$0xff]  ;;  %v1527_v50 = vld [vmem:[%s1790_s1] sm:$0xf]  ;;  %v1534_v52 = vpack.c.bf16 %v302_v45, %v301_v44  ;;  %v267_v55 = vld [vmem:[%s1441_s28 + $0x30] sm:$0xff] }
  0x44   : > { %952 = vmatpush3.bf16.xpose.msra.mxu0 %v1485_v26  ;;  %965 = vmatprep.mubr.bf16.mxu0 %v1527_v50  ;;  %v1538_v54 = vpack.c.bf16 %v316_v49, %v315_v48  ;;  %v268_v56 = vld [vmem:[%s1441_s28 + $0x38] sm:$0xff]  ;;  %v299_v57 = vld [vmem:[%s1441_s28 + $0x130] sm:$0xff]  ;;  %v281_v59 = vld [vmem:[%s1441_s28 + $0xa0] sm:$0xff] }
  0x45   : > { %970 = vmatpush3.bf16.xpose.msra.mxu1 %v1487_v27  ;;  %953 = vmatprep.subr.bf16.mxu0 %v1489_v28  ;;  %v300_v58 = vld [vmem:[%s1441_s28 + $0x138] sm:$0xff]  ;;  %v282_v60 = vld [vmem:[%s1441_s28 + $0xa8] sm:$0xff]  ;;  %v313_v61 = vld [vmem:[%s1441_s28 + $0x1a0] sm:$0xff]  ;;  %v1552_v63 = vpack.c.bf16 %v268_v56, %v267_v55 }
  0x46   : > { %971 = vmatprep.subr.bf16.mxu1 %v1491_v29  ;;  %983 = vmatprep.mubr.bf16.mxu1 %v1527_v50  ;;  %v314_v62 = vld [vmem:[%s1441_s28 + $0x1a8] sm:$0xff]  ;;  %v1554_v0 = vpack.c.bf16 %v300_v58, %v299_v57  ;;  %v1556_v1 = vpack.c.bf16 %v282_v60, %v281_v59  ;;  %v265_v4 = vld [vmem:[%s1441_s28 + $0x20] sm:$0xff]  ;;  %v279_v10 = vld [vmem:[%s1441_s28 + $0x90] sm:$0xff] }
  0x47   : > { %v1558_v2 = vpack.c.bf16 %v314_v62, %v313_v61  ;;  %v266_v5 = vld [vmem:[%s1441_s28 + $0x28] sm:$0xff]  ;;  %v297_v6 = vld [vmem:[%s1441_s28 + $0x120] sm:$0xff]  ;;  %v280_v11 = vld [vmem:[%s1441_s28 + $0x98] sm:$0xff] }
  0x48   : > { %v298_v9 = vld [vmem:[%s1441_s28 + $0x128] sm:$0xff]  ;;  %v311_v13 = vld [vmem:[%s1441_s28 + $0x190] sm:$0xff]  ;;  %v312_v14 = vld [vmem:[%s1441_s28 + $0x198] sm:$0xff]  ;;  %v1572_v15 = vpack.c.bf16 %v266_v5, %v265_v4  ;;  %v1576_v19 = vpack.c.bf16 %v280_v11, %v279_v10 }
  0x49   : > { %v1574_v18 = vpack.c.bf16 %v298_v9, %v297_v6  ;;  %v1578_v20 = vpack.c.bf16 %v312_v14, %v311_v13  ;;  %v263_v21 = vld [vmem:[%s1441_s28 + $0x10] sm:$0xff]  ;;  %v264_v22 = vld [vmem:[%s1441_s28 + $0x18] sm:$0xff]  ;;  %v277_v25 = vld [vmem:[%s1441_s28 + $0x80] sm:$0xff] }
  0x4a   : > { %v295_v23 = vld [vmem:[%s1441_s28 + $0x110] sm:$0xff]  ;;  %v296_v24 = vld [vmem:[%s1441_s28 + $0x118] sm:$0xff]  ;;  %v278_v30 = vld [vmem:[%s1441_s28 + $0x88] sm:$0xff]  ;;  %v1592_v33 = vpack.c.bf16 %v264_v22, %v263_v21 }
  0x4b   : > { %v309_v31 = vld [vmem:[%s1441_s28 + $0x180] sm:$0xff]  ;;  %v310_v32 = vld [vmem:[%s1441_s28 + $0x188] sm:$0xff]  ;;  %v1594_v34 = vpack.c.bf16 %v296_v24, %v295_v23  ;;  %v1596_v35 = vpack.c.bf16 %v278_v30, %v277_v25 }
  0x4c   : > { %954 = vmatpush3.bf16.xpose.msra.mxu0 %v1505_v38  ;;  %v1598_v36 = vpack.c.bf16 %v310_v32, %v309_v31  ;;  %v261_v37 = vld [vmem:[%s1441_s28] sm:$0xff]  ;;  %v262_v42 = vld [vmem:[%s1441_s28 + $0x8] sm:$0xff] }
  0x4d   : > { %972 = vmatpush3.bf16.xpose.msra.mxu1 %v1507_v39  ;;  %955 = vmatprep.subr.bf16.mxu0 %v1509_v40  ;;  %v293_v43 = vld [vmem:[%s1441_s28 + $0x100] sm:$0xff]  ;;  %v294_v44 = vld [vmem:[%s1441_s28 + $0x108] sm:$0xff]  ;;  %v1608_v45 = vpack.c.bf16 %v262_v42, %v261_v37  ;;  %v1154_v42 = vld [vmem:[%s1792_s3 + $0x38] sm:$0xff]   ;;  %s1303_s28 = smov [#allocation6]  }
  0x4e   : > { %973 = vmatprep.subr.bf16.mxu1 %v1511_v41  ;;  %v1610_v46 = vpack.c.bf16 %v294_v44, %v293_v43  ;;  %v1301_v43 = vmov 0.0   ;;  %v1155_v44 = vld [vmem:[%s1792_s3 + $0x30] sm:$0xff]   ;;  %s1206_s29 = sshll.u32 %s1303_s28, 4  ;;  %s1207_s29 = int_to_ptr.vmem [resolvable:$false] %s1206_s29 }
  0x4f   : > { %s1208_s12 = scalar_lea.vmem %s1207_s29, 512  ;;  %p1209_p5 = scmp.lt.s32.totalorder %s1709_s9, %s1207_s29 }
  0x50   : > { %p1210_p7 = scmp.lt.s32.totalorder %s1208_s12, %s1202_s26 }
  0x52   : > { %p1211_p8 = por %p1210_p7, %p1209_p5 }
  0x54   : > { %956 = vmatpush3.bf16.xpose.msra.mxu0 %v1532_v51  ;;  %p1212_p10 = pnand %p1211_p8, %p1205_p4 }
  0x55   : > { %974 = vmatpush3.bf16.xpose.msra.mxu1 %v1534_v52  ;;  %957 = vmatprep.subr.bf16.mxu0 %v1536_v53 }
  0x56   : > { %975 = vmatprep.subr.bf16.mxu1 %v1538_v54 }
  0x5c   : > { %958 = vmatpush3.bf16.xpose.msra.mxu0 %v1552_v63 }
  0x5d   : > { %976 = vmatpush3.bf16.xpose.msra.mxu1 %v1554_v0  ;;  %959 = vmatprep.subr.bf16.mxu0 %v1556_v1 }
  0x5e   : > { %977 = vmatprep.subr.bf16.mxu1 %v1558_v2 }
  0x64   : > { %960 = vmatpush3.bf16.xpose.msra.mxu0 %v1572_v15 }
  0x65   : > { %978 = vmatpush3.bf16.xpose.msra.mxu1 %v1574_v18  ;;  %961 = vmatprep.subr.bf16.mxu0 %v1576_v19 }
  0x66   : > { %979 = vmatprep.subr.bf16.mxu1 %v1578_v20 }
  0x6c   : > { %962 = vmatpush3.bf16.xpose.msra.mxu0 %v1592_v33 }
  0x6d   : > { %980 = vmatpush3.bf16.xpose.msra.mxu1 %v1594_v34  ;;  %963 = vmatprep.subr.bf16.mxu0 %v1596_v35 }
  0x6e   : > { %981 = vmatprep.subr.bf16.mxu1 %v1598_v36 }
  0x74   : > { %964 = vmatpush3.bf16.xpose.msra.mxu0 %v1608_v45 }
  0x75   : > { %982 = vmatpush3.bf16.xpose.msra.mxu1 %v1610_v46  ;;  %985 = vmatprep.subr.bf16.mxu0 %v1450_v3 }
  0x76   : > { %1007 = vmatprep.subr.bf16.mxu1 %v1455_v7 }
  0x7b   : > { %966 = vmatmul.mubr.bf16.vlgmr.msra.gmra.mxu0 %v1527_v50 }
  0x7c   : > { %984 = vmatmul.mubr.bf16.vlgmr.msra.gmra.mxu1 %v1527_v50  ;;  %986 = vmatpush3.bf16.msra.mxu0 %v1457_v8 }
  0x7d   : > { %987 = vmatprep.subr.bf16.mxu0 %v1470_v16  ;;  %1008 = vmatpush3.bf16.msra.mxu1 %v1463_v12 }
  0x7e   : > { %1009 = vmatprep.subr.bf16.mxu1 %v1472_v17 }
  0x80   : > { %988 = vmatpush3.bf16.msra.mxu0 %v1485_v26 }
  0x81   : > { %989 = vmatprep.subr.bf16.mxu0 %v1489_v28  ;;  %1010 = vmatpush3.bf16.msra.mxu1 %v1487_v27 }
  0x82   : > { %1011 = vmatprep.subr.bf16.mxu1 %v1491_v29 }
  0x84   : > { %990 = vmatpush3.bf16.msra.mxu0 %v1505_v38 }
  0x85   : > { %991 = vmatprep.subr.bf16.mxu0 %v1509_v40  ;;  %1012 = vmatpush3.bf16.msra.mxu1 %v1507_v39 }
  0x86   : > { %1013 = vmatprep.subr.bf16.mxu1 %v1511_v41 }
  0x88   : > { %992 = vmatpush3.bf16.msra.mxu0 %v1532_v51 }
  0x89   : > { %993 = vmatprep.subr.bf16.mxu0 %v1536_v53  ;;  %1014 = vmatpush3.bf16.msra.mxu1 %v1534_v52 }
  0x8a   : > { %1015 = vmatprep.subr.bf16.mxu1 %v1538_v54 }
  0x8c   : > { %994 = vmatpush3.bf16.msra.mxu0 %v1552_v63 }
  0x8d   : > { %995 = vmatprep.subr.bf16.mxu0 %v1556_v1  ;;  %1016 = vmatpush3.bf16.msra.mxu1 %v1554_v0 }
  0x8e   : > { %1017 = vmatprep.subr.bf16.mxu1 %v1558_v2 }
  0x90   : > { %996 = vmatpush3.bf16.msra.mxu0 %v1572_v15 }
  0x91   : > { %997 = vmatprep.subr.bf16.mxu0 %v1576_v19  ;;  %1018 = vmatpush3.bf16.msra.mxu1 %v1574_v18 }
  0x92   : > { %1019 = vmatprep.subr.bf16.mxu1 %v1578_v20 }
  0x94   : > { %998 = vmatpush3.bf16.msra.mxu0 %v1592_v33 }
  0x95   : > { %999 = vmatprep.subr.bf16.mxu0 %v1596_v35  ;;  %1020 = vmatpush3.bf16.msra.mxu1 %v1594_v34 }
  0x96   : > { %1021 = vmatprep.subr.bf16.mxu1 %v1598_v36 }
  0x98   : > { %1000 = vmatpush3.bf16.msra.mxu0 %v1608_v45 }
  0x99   : > { %1022 = vmatpush3.bf16.msra.mxu1 %v1610_v46  ;;  %1074 = vmatprep.subr.bf16.mxu0 %v1301_v43 }
  0x9a   : > { %1038 = vmatprep.subr.bf16.mxu1 %v1450_v3 }
 0x13b   : > { %v409_v47 = vpop.f32.mrf.mxu0 }
 0x13c   : > { %v450_v48 = vpop.f32.mrf.mxu1 }
 0x13d   : > { %v411_v49 = vpop.f32.mrf.mxu0 }
 0x13e   : > { %v452_v50 = vpop.f32.mrf.mxu1  ;;  %v457_v55 = vmax.f32 %v409_v47, %v411_v49 }
 0x13f   : > { %v413_v56 = vpop.f32.mrf.mxu0  ;;  %v460_v60 = vmax.f32 %v450_v48, %v452_v50 }
 0x140   : > { %v454_v57 = vpop.f32.mrf.mxu1  ;;  %458 = vmax.xlane.f32.xlu0 %v457_v55 }
 0x141   : > { %v414_v58 = vpop.f32.mrf.mxu0 }
 0x142   : > { %v455_v59 = vpop.f32.mrf.mxu1 }
 0x144   : > { %461 = vmax.xlane.f32.xlu0 %v460_v60 }
 0x1c9   : > { %v459_v61 = vpop.xlane.xlu0 %458 }
 0x1ca   : > { %v463_v62 = vsub.f32 %v409_v47, %v459_v61  ;;  %v464_v4 = vsub.f32 %v411_v49, %v459_v61 }
 0x1cc   : > { %v467_v5 = vmul.f32 1.442695, %v463_v62  ;;  %v469_v6 = vmul.f32 1.442695, %v464_v4 }
 0x1cd   : > { %v462_v9 = vpop.xlane.xlu0 %461 }
 0x1ce   : > { %1162 = vpow2.f32 %v467_v5  ;;  %v465_v3 = vsub.f32 %v450_v48, %v462_v9  ;;  %v466_v10 = vsub.f32 %v452_v50, %v462_v9 }
 0x1cf   : > { %1164 = vpow2.f32 %v469_v6 }
 0x1d0   : > { %v471_v11 = vmul.f32 1.442695, %v465_v3  ;;  %v473_v13 = vmul.f32 1.442695, %v466_v10 }
 0x1d2   : > { %1166 = vpow2.f32 %v471_v11 }
 0x1d3   : > { %1168 = vpow2.f32 %v473_v13 }
 0x1db   : > { %v1163_v14 = vpop.eup %1162 }
 0x1dc   : > { %v1165_v21 = vpop.eup %1164  ;;  %v481_v22 = vpack.c.bf16 %v1163_v14, %v1163_v14 }
 0x1dd   : > { %v482_v23 = vpack.c.bf16 %v1165_v21, %v1165_v21  ;;  %v475_v24 = vadd.f32 %v1165_v21, %v1163_v14 }
 0x1df   : > { %v1167_v25 = vpop.eup %1166  ;;  %517 = vmatprep.mubr.bf16.mxu0 %v482_v23  ;;  %476 = vadd.xlane.f32.xlu1 %v475_v24 }
 0x1e0   : > { %v1169_v30 = vpop.eup %1168  ;;  %518 = vmatmul.mubr.bf16.vlgmr.msra.gmra.mxu0 %v481_v22  ;;  %v483_v31 = vpack.c.bf16 %v1167_v25, %v1167_v25 }
 0x1e1   : > { %v484_v32 = vpack.c.bf16 %v1169_v30, %v1169_v30  ;;  %v478_v37 = vadd.f32 %v1169_v30, %v1167_v25  ;;  %1075 = vmatpush3.bf16.msra.mxu0 %v1154_v42  ;;  %1090 = vmatprep.mubr.msk.bf16.mxu0 %vm1302_vm0, %v1301_v43 }
 0x1e2   : > { %1076 = vmatprep.subr.bf16.mxu0 %v1301_v43 }
 0x1e3   : > { %557 = vmatprep.mubr.bf16.mxu1 %v484_v32  ;;  %479 = vadd.xlane.f32.xlu1 %v478_v37 }
 0x1e4   : > { %558 = vmatmul.mubr.bf16.vlgmr.msra.gmra.mxu1 %v483_v31 }
 0x1e5   : > { %1039 = vmatpush3.bf16.xpose.msra.mxu1 %v1457_v8  ;;  %1077 = vmatpush3.bf16.msra.mxu0 %v1155_v44  ;;  %v1156_v8 = vld [vmem:[%s1792_s3 + $0x28] sm:$0xff]  }
 0x1e6   : > { %1040 = vmatprep.subr.bf16.mxu1 %v1470_v16  ;;  %1078 = vmatprep.subr.bf16.mxu0 %v1301_v43  ;;  %v1157_v16 = vld [vmem:[%s1792_s3 + $0x20] sm:$0xff]  }
 0x1e9   : > { %1079 = vmatpush3.bf16.msra.mxu0 %v1156_v8 }
 0x1ea   : > { %1080 = vmatprep.subr.bf16.mxu0 %v1301_v43 }
 0x1ed   : > { %1041 = vmatpush3.bf16.xpose.msra.mxu1 %v1485_v26  ;;  %1081 = vmatpush3.bf16.msra.mxu0 %v1157_v16  ;;  %v1158_v26 = vld [vmem:[%s1792_s3 + $0x18] sm:$0xff]  }
 0x1ee   : > { %1042 = vmatprep.subr.bf16.mxu1 %v1489_v28  ;;  %1082 = vmatprep.subr.bf16.mxu0 %v1301_v43  ;;  %v1159_v28 = vld [vmem:[%s1792_s3 + $0x10] sm:$0xff]  }
 0x1f1   : > { %1083 = vmatpush3.bf16.msra.mxu0 %v1158_v26 }
 0x1f2   : > { %1084 = vmatprep.subr.bf16.mxu0 %v1301_v43 }
 0x1f5   : > { %1043 = vmatpush3.bf16.xpose.msra.mxu1 %v1505_v38  ;;  %1085 = vmatpush3.bf16.msra.mxu0 %v1159_v28  ;;  %v1160_v38 = vld [vmem:[%s1792_s3 + $0x8] sm:$0xff]  }
 0x1f6   : > { %1044 = vmatprep.subr.bf16.mxu1 %v1509_v40  ;;  %1086 = vmatprep.subr.bf16.mxu0 %v1301_v43  ;;  %v1161_v40 = vld [vmem:[%s1792_s3] sm:$0xff]  }
 0x1f9   : > { %1087 = vmatpush3.bf16.msra.mxu0 %v1160_v38 }
 0x1fa   : > { %1088 = vmatprep.subr.bf16.mxu0 %v1301_v43 }
 0x1fd   : > { %1045 = vmatpush3.bf16.xpose.msra.mxu1 %v1532_v51  ;;  %1089 = vmatpush3.bf16.msra.mxu0 %v1161_v40 }
 0x1fe   : > { %1046 = vmatprep.subr.bf16.mxu1 %v1536_v53  ;;  %1056 = vmatprep.subr.bf16.mxu0 %v1455_v7 }
 0x205   : > { %1047 = vmatpush3.bf16.xpose.msra.mxu1 %v1552_v63 }
 0x206   : > { %1048 = vmatprep.subr.bf16.mxu1 %v1556_v1 }
 0x20d   : > { %1049 = vmatpush3.bf16.xpose.msra.mxu1 %v1572_v15 }
 0x20e   : > { %1050 = vmatprep.subr.bf16.mxu1 %v1576_v19 }
 0x215   : > { %1051 = vmatpush3.bf16.xpose.msra.mxu1 %v1592_v33 }
 0x216   : > { %1052 = vmatprep.subr.bf16.mxu1 %v1596_v35 }
 0x21d   : > { %1053 = vmatpush3.bf16.xpose.msra.mxu1 %v1608_v45 }
 0x268   : > { %v477_v51 = vpop.xlane.xlu1 %476 }
 0x269   : > { %1170 = vrcp.f32 %v477_v51 }
 0x26c   : > { %v480_v53 = vpop.xlane.xlu1 %479 }
 0x26d   : > { %1172 = vrcp.f32 %v480_v53 }
 0x276   : > { %v1171_v47 = vpop.eup %1170 }
 0x27a   : > { %v1173_v49 = vpop.eup %1172 }
 0x2a0   : > { %v1001_v63 = vpop.f32.mrf.mxu0 }
 0x2a2   : > { %v1002_v1 = vpop.f32.mrf.mxu0 }
 0x2a3   : > { %v1003_v33 = vadd.f32 %v1002_v1, %v1001_v63 }
 0x2a4   : > { %v1004_v15 = vpop.f32.mrf.mxu0  ;;  %v1023_v19 = vpop.f32.mrf.mxu1 }
 0x2a5   : > { %v569_v55 = vmul.f32 %v1171_v47, %v1003_v33 }
 0x2a6   : > { %v1005_v35 = vpop.f32.mrf.mxu0  ;;  %v1024_v45 = vpop.f32.mrf.mxu1 }
 0x2a7   : > { %v1025_v48 = vadd.f32 %v1024_v45, %v1023_v19 }
 0x2a8   : > { %v1026_v50 = vpop.f32.mrf.mxu1 }
 0x2a9   : > { %v570_v56 = vmul.f32 %v1173_v49, %v1025_v48 }
 0x2aa   : > { %v1027_v7 = vpop.f32.mrf.mxu1 }
 0x2ab   : > { %v571_v57 = vpack.c.bf16 %v570_v56, %v569_v55 }
 0x2ad   : > { %1091 = vmatmul.mubr.bf16.vlgmr.msra.gmra.mxu0 %v571_v57 }
 0x2ae   : > { %1057 = vmatpush3.bf16.xpose.msra.mxu0 %v1463_v12  ;;  %v358_v12 = vld [vmem:[%s1791_s2] sm:$0xff] }
 0x2af   : > { %1058 = vmatprep.subr.bf16.mxu0 %v1472_v17 }
 0x2b6   : > { %1059 = vmatpush3.bf16.xpose.msra.mxu0 %v1487_v27 }
 0x2b7   : > { %1060 = vmatprep.subr.bf16.mxu0 %v1491_v29 }
 0x2be   : > { %1061 = vmatpush3.bf16.xpose.msra.mxu0 %v1507_v39 }
 0x2bf   : > { %1062 = vmatprep.subr.bf16.mxu0 %v1511_v41 }
 0x2c6   : > { %1063 = vmatpush3.bf16.xpose.msra.mxu0 %v1534_v52 }
 0x2c7   : > { %1064 = vmatprep.subr.bf16.mxu0 %v1538_v54 }
 0x2ce   : > { %1065 = vmatpush3.bf16.xpose.msra.mxu0 %v1554_v0 }
 0x2cf   : > { %1066 = vmatprep.subr.bf16.mxu0 %v1558_v2 }
 0x2d6   : > { %1067 = vmatpush3.bf16.xpose.msra.mxu0 %v1574_v18 }
 0x2d7   : > { %1068 = vmatprep.subr.bf16.mxu0 %v1578_v20 }
 0x2de   : > { %1069 = vmatpush3.bf16.xpose.msra.mxu0 %v1594_v34 }
 0x2df   : > { %1070 = vmatprep.subr.bf16.mxu0 %v1598_v36 }
 0x2e6   : > { %1071 = vmatpush3.bf16.xpose.msra.mxu0 %v1610_v46 }
 0x36d   : > { %v654_v17 = vpop.f32.mrf.mxu0 }
 0x36e   : > { %v661_v27 = vadd.f32 %v654_v17, %v358_v12 }
 0x36f   : > { %v1092_v29 = vpop.f32.mrf.mxu0 }
 0x370   : > { %663 = vst [vmem:[%s254_s7] sm:$0xff] %v661_v27  ;;  %v665_v39 = vpack.c.bf16 %v661_v27, %v661_v27 }
 0x371   : > { %v657_v41 = vpop.f32.mrf.mxu0 }
 0x372   : > { %v662_v52 = vadd.f32 %v657_v41, %v358_v12  ;;  %1054 = vmatprep.mubr.bf16.mxu1 %v665_v39 }
 0x373   : > { %v1093_v54 = vpop.f32.mrf.mxu0  ;;  %1055 = vmatmul.mubr.bf16.vlgmr.msra.gmra.mxu1 %v665_v39 }
 0x374   : > { %664 = vst [vmem:[%s254_s7 + $0x8] sm:$0xff] %v662_v52  ;;  %v666_v0 = vpack.c.bf16 %v662_v52, %v662_v52 }
 0x376   : > { %1072 = vmatprep.mubr.bf16.mxu0 %v666_v0 }
 0x377   : > { %1073 = vmatmul.mubr.bf16.vlgmr.msra.gmra.mxu0 %v666_v0 }
 0x378   : > { %1215 = shalt.err (!%p1212_p10)
}
 0x379   : > { %s1216_s14 = scalar_lea.hbm %s1714_s17, 256  ;;  %s1220_s8 = scalar_lea.hbm %s1794_s5, 512 }
 0x37a   : > { %p1217_p0 = scmp.ne.s32.totalorder %s1714_s17, %s1216_s14  ;;  %p1221_p1 = scmp.lt.s32.totalorder %s1714_s17, %s1794_s5 }
 0x37b   : > { %p1222_p3 = scmp.lt.s32.totalorder %s1220_s8, %s1216_s14 }
 0x37c   : > { %p1218_p2 = pnand %p1217_p0, %p1803_p12 }
 0x37d   : > { %p1223_p6 = por %p1222_p3, %p1221_p1 }
 0x37e   : > { %p1219_p9 = pneg %p1218_p2 }
 0x380   : > { %p1224_p11 = pnand %p1223_p6, %p1219_p9 }
 0x382   : > { %1227 = shalt.err (!%p1224_p11)
}
 0x383   : > { %s1304_s11 = smov 128   ;;  %s1305_s13 = smov 8   ;;  %v1306_v20 = vmov 0  }
 0x384   : > { %1097 = dma.vmem_to_hbm [thread:$0]  (%p1803_p12), %s1709_s9, 256, %s1714_s17, %s781_s25, %s1304_s11, %s1304_s11, %s1305_s13  }
 0x385   : > { %s925_s26 = sshll.u32 %s1437_s23, 3  ;;  %s947_s25 = sshll.u32 %s1361_s22, 7 }
 0x386   : > { %s247_s9 = scalar_lea.vmem [#allocation5], %s925_s26  ;;  %s1746_s12 = scalar_lea.hbm %s1793_s4, %s947_s25 }
 0x387   : > { %s795_s17 = sshll.u32 %s247_s9, 4  ;;  %s776_s14 = scalar_lea.sflag [#allocation4], %s1437_s23  ;;  %s1741_s17 = int_to_ptr.vmem [resolvable:$true] %s795_s17 }
 0x388   : > { %s1228_s15 = scalar_lea.vmem %s1741_s17, 128  ;;  %s1307_s22 = smov [#allocation5]  }
 0x389   : > { %p1229_p13 = scmp.ne.s32.totalorder %s1741_s17, %s1228_s15  ;;  %s1232_s16 = sshll.u32 %s1307_s22, 4  ;;  %s1233_s16 = int_to_ptr.vmem [resolvable:$false] %s1232_s16 }
 0x38a   : > { %s1234_s8 = scalar_lea.vmem %s1233_s16, 256  ;;  %p1235_p7 = scmp.lt.s32.totalorder %s1741_s17, %s1233_s16 }
 0x38b   : > { %p1230_p4 = pnand %p1229_p13, %p1803_p12  ;;  %p1236_p8 = scmp.lt.s32.totalorder %s1234_s8, %s1228_s15 }
 0x38d   : > { %p1231_p5 = pneg %p1230_p4  ;;  %p1237_p10 = por %p1236_p8, %p1235_p7 }
 0x38f   : > { %p1238_p0 = pnand %p1237_p10, %p1231_p5 }
 0x433   : > { %v701_v2 = vpop.f32.mrf.mxu1 }
 0x434   : > { %vm749_vm1 = vcmp.gt.f32.partialorder %v701_v2, 0.0 }
 0x435   : > { %vm753_vm2 = vmpackc.low %vm749_vm1, %vm749_vm1  ;;  %v703_v18 = vpop.f32.mrf.mxu1 }
 0x436   : > { %vm754_vm3 = vmpackc.even %vm753_vm2, %vm753_vm2  ;;  %vm750_vm4 = vcmp.gt.f32.partialorder %v703_v18, 0.0 }
 0x437   : > { %v761_v34 = vsel %vm754_vm3, 16843009, %v1306_v20  ;;  %vm755_vm5 = vmpackc.low %vm750_vm4, %vm750_vm4  ;;  %v705_v36 = vpop.f32.mrf.mxu1  ;;  %v742_v46 = vpop.f32.mrf.mxu0 }
 0x438   : > { %vm756_vm6 = vmpackc.even %vm755_vm5, %vm755_vm5  ;;  %vm751_vm7 = vcmp.gt.f32.partialorder %v742_v46, 0.0  ;;  %v765_v61 = vunpack.c.0.s8 %v761_v34 }
 0x439   : > { %v762_v58 = vsel %vm756_vm6, 16843009, %v1306_v20  ;;  %vm757_vm8 = vmpackc.low %vm751_vm7, %vm751_vm7  ;;  %v706_v59 = vpop.f32.mrf.mxu1  ;;  %v744_v60 = vpop.f32.mrf.mxu0 }
 0x43a   : > { %v766_v62 = vunpack.c.0.s8 %v762_v58  ;;  %vm758_vm9 = vmpackc.even %vm757_vm8, %vm757_vm8  ;;  %vm752_vm10 = vcmp.gt.f32.partialorder %v744_v60, 0.0 }
 0x43b   : > { %v763_v4 = vsel %vm758_vm9, 16843009, %v1306_v20  ;;  %vm759_vm11 = vmpackc.low %vm752_vm10, %vm752_vm10  ;;  %v746_v5 = vpop.f32.mrf.mxu0 }
 0x43c   : > { %v769_v6 = vpack.c.b16 %v766_v62, %v765_v61  ;;  %vm760_vm12 = vmpackc.even %vm759_vm11, %vm759_vm11  ;;  %v767_v11 = vunpack.c.0.s8 %v763_v4 }
 0x43d   : > { %v764_v9 = vsel %vm760_vm12, 16843009, %v1306_v20  ;;  %v747_v3 = vpop.f32.mrf.mxu0 }
 0x43e   : > { %v770_v10 = vpack.c.b8 %v769_v6, %v769_v6  ;;  %v768_v13 = vunpack.c.0.s8 %v764_v9 }
 0x440   : > { %773 = vst [vmem:[%s247_s9] sm:$0xf] %v770_v10  ;;  %v771_v14 = vpack.c.b16 %v768_v13, %v767_v11 }
 0x442   : > { %v772_v21 = vpack.c.b8 %v771_v14, %v771_v14 }
 0x444   : > { %774 = vst [vmem:[%s247_s9 + $0x4] sm:$0xf] %v772_v21 }
 0x445   : > { %1241 = shalt.err (!%p1238_p0)
}
 0x446   : > { %s1242_s7 = scalar_lea.hbm %s1746_s12, 128  ;;  %s1246_s13 = scalar_lea.hbm %s1793_s4, 256 }
 0x447   : > { %p1243_p2 = scmp.ne.s32.totalorder %s1746_s12, %s1242_s7  ;;  %p1247_p3 = scmp.lt.s32.totalorder %s1746_s12, %s1793_s4 }
 0x448   : > { %p1248_p6 = scmp.lt.s32.totalorder %s1246_s13, %s1242_s7 }
 0x449   : > { %p1244_p9 = pnand %p1243_p2, %p1803_p12 }
 0x44a   : > { %p1249_p11 = por %p1248_p6, %p1247_p3 }
 0x44b   : > { %p1245_p1 = pneg %p1244_p9 }
 0x44d   : > { %p1250_p13 = pnand %p1249_p11, %p1245_p1 }
 0x44f   : > { %1253 = shalt.err (!%p1250_p13)
}
 0x450   : > { %s1308_s25 = smov 64   ;;  %s1309_s28 = smov 4  }
 0x451   : > { %1096 = dma.vmem_to_hbm [thread:$0]  (%p1803_p12), %s1741_s17, 128, %s1746_s12, %s776_s14, %s1308_s25, %s1308_s25, %s1309_s28  }
 0x452 PF: > { %s826_s29 = sand.u32 1, %s1284_s18   ;;  %p1804_p4 = scmp.ne.s32.totalorder %s1800_s6, 0 }
 0x453   : > { %p1805_p5 = scmp.ge.s32.totalorder %s1296_s21, 2  ;;  %s827_s15 = scalar_lea.sflag [#allocation4], %s826_s29 }
 0x455   : > { %p1105_p7 = pnand %p1805_p5, %p1804_p4 }
 0x457   : > { %p1106_p8 = pneg %p1105_p7 }
 0x459   : > { %1275 = dma.done.wait (%p1106_p8), %s827_s15, 128  }
 0x45a   : > { %1277 = vsyncadd (%p1106_p8), %s827_s15, 4294967168  ;;  %s836_s22 = scalar_lea.sflag [#allocation7], %s826_s29 }
 0x45b   : > { %1279 = dma.done.wait (%p1106_p8), %s836_s22, 256  }
 0x45c   : > { %1281 = vsyncadd (%p1106_p8), %s836_s22, 4294967040  ;;  %p22_p12 = scmp.ge.s32.totalorder %s1365_s24, 4   ;;  %s1806_s18 = smov %s1288_s19 }
 0x45d   : > { %s1807_s19 = smov %s1292_s20  ;;  %s1808_s20 = smov %s1377_s27 }
 0x45e   : > { %s1809_s21 = smov %s1365_s24  ;;  %24 = sbr.rel (!%p22_p12) target bundleno = 7 (0x7), region = 98 }
 0x463   :  { %841 = vsyncpa [#allocation3], 1 }
 0x464   :  { %843 = vsyncpa [#allocation3 + $0x1], 1 }
 0x465   :  { %844 = vsyncpa [#allocation4], 1 }
 0x466   :  { %846 = vsyncpa [#allocation4 + $0x1], 1 }
 0x467   :  { %847 = vsyncpa [#allocation7], 1 }
 0x468   :  { %849 = vsyncpa [#allocation7 + $0x1], 1 }

</bundles_post_ra>
